<compile_context>
chip_gen: v5e
topology: v5e:2x2
jax: 0.10.0
libtpu: 0.0.40
codegen_flags: <defaults>
</compile_context>

<pallas_src>
import jax
import jax.numpy as jnp
import numpy as np
from jax import lax
from jax.experimental import pallas as pl
from jax.experimental.pallas import tpu as pltpu

NEG_SLOPE = 0.2        # GATConv default negative_slope
MASK_VAL = -1e30
TM = 32                # destination-node rows per grid block (multiple of 8)
HP = 128               # padded lane width for hidden / output features


# --------------------------- kernels ---------------------------

def _gat_block(x_ref, adj_ref, w_ref, p_ref):
    """Dense single-head GATConv (+ fused ReLU) for one row block of targets."""
    tm = adj_ref.shape[0]
    row0 = pl.multiple_of(pl.program_id(0) * tm, tm)

    w = w_ref[...]                                      # [F_in, H]
    a_src = p_ref[0:1, :]                               # [1, H]
    a_dst = p_ref[1:2, :]                               # [1, H]
    b = p_ref[2:3, :]                                   # [1, H]

    # Projections (MXU): all source nodes + this block's destination nodes.
    h_all = jnp.dot(x_ref[...], w, preferred_element_type=jnp.float32)        # [N, H]
    h_dst = jnp.dot(x_ref[pl.ds(row0, tm), :], w,
                    preferred_element_type=jnp.float32)                       # [TM, H]

    # Per-node attention scalars.
    alpha_src = jnp.sum(h_all * a_src, axis=-1, keepdims=True)                # [N, 1]
    alpha_dst = jnp.sum(h_dst * a_dst, axis=-1, keepdims=True)                # [TM, 1]

    # Broadcast alpha_src across columns with a K=1 rank-1 matmul
    # (no [N,H] ones matrix, no transpose): out[i, j] = alpha_src[j].
    ones_col = jnp.ones((tm, 1), jnp.float32)
    alpha_src_bc = lax.dot_general(ones_col, alpha_src,
                                   (((1,), (1,)), ((), ())),
                                   preferred_element_type=jnp.float32)        # [TM, N]

    # e[i, j] = leaky_relu(alpha_dst[i] + alpha_src[j]), masked by adjacency.
    e = alpha_dst + alpha_src_bc
    e = jnp.where(e > 0, e, NEG_SLOPE * e)
    e = jnp.where(adj_ref[...] > 0, e, MASK_VAL)

    # Row-wise softmax over neighbors.  Single mask: exp(MASK_VAL - rowmax)
    # underflows to 0, and the self-loop keeps every row non-empty.
    e = e - jnp.max(e, axis=-1, keepdims=True)
    p = jnp.exp(e)
    denom = jnp.sum(p, axis=-1, keepdims=True)
    att = p * pl.reciprocal(denom, approx=False)                              # [TM, N]

    out = jnp.dot(att, h_all, preferred_element_type=jnp.float32) + b         # [TM, H]
    return jnp.maximum(out, 0.0)                        # fused ReLU


def gat_relu_kernel(x_ref, adj_ref, w_ref, p_ref, o_ref):
    o_ref[...] = _gat_block(x_ref, adj_ref, w_ref, p_ref)


def gat_relu_linear_kernel(x_ref, adj_ref, w_ref, p_ref, w3_ref, o_ref):
    h = _gat_block(x_ref, adj_ref, w_ref, p_ref)        # [TM, H]
    b3 = p_ref[3:4, :]                                  # [1, HP]
    o_ref[...] = jnp.dot(h, w3_ref[...], preferred_element_type=jnp.float32) + b3


# --------------------------- wrappers ---------------------------

def _gat_call(x, adj, w, p, w3=None):
    n = x.shape[0]
    assert n % TM == 0, "node count must be a multiple of the row tile"
    args = [x, adj, w, p]
    in_specs = [
        pl.BlockSpec(x.shape, lambda i: (0, 0)),        # all source features
        pl.BlockSpec((TM, n), lambda i: (i, 0)),        # adjacency row block
        pl.BlockSpec(w.shape, lambda i: (0, 0)),        # projection weight
        pl.BlockSpec(p.shape, lambda i: (0, 0)),        # packed small params
    ]
    if w3 is None:
        kernel = gat_relu_kernel
        h_out = w.shape[1]
    else:
        kernel = gat_relu_linear_kernel
        args.append(w3)
        in_specs.append(pl.BlockSpec(w3.shape, lambda i: (0, 0)))
        h_out = w3.shape[1]

    return pl.pallas_call(
        kernel,
        grid=(n // TM,),
        in_specs=in_specs,
        out_specs=pl.BlockSpec((TM, h_out), lambda i: (i, 0)),
        out_shape=jax.ShapeDtypeStruct((n, h_out), jnp.float32),
        compiler_params=pltpu.CompilerParams(
            dimension_semantics=("parallel",),
            vmem_limit_bytes=32 * 1024 * 1024),
    )(*args)


def gnn_forward(x, adj, packed, f_out):
    """relu(GAT1(x)) -> relu(GAT2(.)) + Linear, all inside Pallas kernels."""
    w1p, p1, w2p, p2, w3p = packed
    h1 = _gat_call(x, adj, w1p, p1)                     # GAT1 + ReLU   -> [N, 128]
    y = _gat_call(h1, adj, w2p, p2, w3p)                # GAT2+ReLU+Lin -> [N, 128]
    return y[:, :f_out]                                 # drop lane padding (host)


# ------------------- host-side helpers (glue) -------------------

def _pad_cols(m, width=HP):
    return jnp.pad(m, ((0, 0), (0, width - m.shape[1])))


def _pad_full(m, rows=HP, cols=HP):
    return jnp.pad(m, ((0, rows - m.shape[0]), (0, cols - m.shape[1])))


def pack_params(params):
    """Zero-pad feature widths to 128 lanes and pack the tiny vectors."""
    (w1, as1, ad1, b1, w2, as2, ad2, b2, w3, b3) = params
    w1p = _pad_cols(w1)                                                    # [F0, 128]
    p1 = jnp.concatenate([_pad_cols(as1), _pad_cols(ad1), _pad_cols(b1)], 0)   # [3, 128]
    w2p = _pad_full(w2)                                                    # [128, 128]
    p2 = jnp.concatenate([_pad_cols(as2), _pad_cols(ad2), _pad_cols(b2),
                          _pad_cols(b3)], 0)                               # [4, 128]
    w3p = _pad_full(w3)                                                    # [128, 128]
    return w1p, p1, w2p, p2, w3p


def edge_index_to_adj(edge_index, num_nodes):
    """adj[dst, src] = 1.0 with self-loops (PyG GATConv add_self_loops=True)."""
    adj = np.zeros((num_nodes, num_nodes), dtype=np.float32)
    src, dst = np.asarray(edge_index[0]), np.asarray(edge_index[1])
    adj[dst, src] = 1.0
    np.fill_diagonal(adj, 1.0)
    return jnp.asarray(adj)


def gat_ref(h_in, adj, w, a_src, a_dst, b):
    h = h_in @ w
    alpha_dst = (h * a_dst).sum(-1, keepdims=True)
    alpha_src = (h * a_src).sum(-1, keepdims=True)
    e = alpha_dst + alpha_src.T
    e = jnp.where(e > 0, e, NEG_SLOPE * e)
    e = jnp.where(adj > 0, e, -jnp.inf)
    att = jax.nn.softmax(e, axis=-1)
    return att @ h + b


def gnn_ref(x, adj, params):
    (w1, as1, ad1, b1, w2, as2, ad2, b2, w3, b3) = params
    h1 = jnp.maximum(gat_ref(x, adj, w1, as1, ad1, b1), 0.0)
    h2 = jnp.maximum(gat_ref(h1, adj, w2, as2, ad2, b2), 0.0)
    return h2 @ w3 + b3


if __name__ == "__main__":
    # SIZE_LAYERS = [in, hidden1, hidden2, out]
    SIZE_LAYERS = [16, 32, 32, 8]
    N = 64  # number of graph nodes

    key = jax.random.PRNGKey(0)
    keys = jax.random.split(key, 12)

    # Node features.
    x = jax.random.normal(keys[0], (N, SIZE_LAYERS[0]), dtype=jnp.float32)

    # Deterministic small graph: bidirectional ring + a few random edges.
    ar = np.arange(N)
    ring_src = np.concatenate([ar, (ar + 1) % N])
    ring_dst = np.concatenate([(ar + 1) % N, ar])
    rnd_src = np.asarray(jax.random.randint(keys[1], (2 * N,), 0, N))
    rnd_dst = np.asarray(jax.random.randint(keys[2], (2 * N,), 0, N))
    edge_index = np.stack([np.concatenate([ring_src, rnd_src]),
                           np.concatenate([ring_dst, rnd_dst])])
    adj = edge_index_to_adj(edge_index, N)

    def init_gat(k, f_in, f_out):
        k1, k2, k3 = jax.random.split(k, 3)
        w = 0.1 * jax.random.normal(k1, (f_in, f_out), dtype=jnp.float32)
        a_src = 0.1 * jax.random.normal(k2, (1, f_out), dtype=jnp.float32)
        a_dst = 0.1 * jax.random.normal(k3, (1, f_out), dtype=jnp.float32)
        b = jnp.zeros((1, f_out), dtype=jnp.float32)
        return w, a_src, a_dst, b

    w1, as1, ad1, b1 = init_gat(keys[3], SIZE_LAYERS[0], SIZE_LAYERS[1])
    w2, as2, ad2, b2 = init_gat(keys[4], SIZE_LAYERS[1], SIZE_LAYERS[2])
    w3 = 0.1 * jax.random.normal(keys[5], (SIZE_LAYERS[2], SIZE_LAYERS[3]),
                                 dtype=jnp.float32)
    b3 = 0.01 * jax.random.normal(keys[6], (1, SIZE_LAYERS[3]), dtype=jnp.float32)

    params = (w1, as1, ad1, b1, w2, as2, ad2, b2, w3, b3)
    packed = pack_params(params)

    out = jax.block_until_ready(gnn_forward(x, adj, packed, SIZE_LAYERS[3]))
    ref = jax.block_until_ready(gnn_ref(x, adj, params))

    np.testing.assert_allclose(np.asarray(out), np.asarray(ref),
                               rtol=1e-4, atol=1e-4)
    print("KERNEL_OK")
</pallas_src>

<mosaic_0001>
module attributes {stable_mosaic.version = 11 : i64} {
  func.func @gat_relu_kernel(%arg0: i32, %arg1: memref<64x16xf32, #tpu.memory_space<vmem>>, %arg2: memref<32x64xf32, #tpu.memory_space<vmem>>, %arg3: memref<16x128xf32, #tpu.memory_space<vmem>>, %arg4: memref<3x128xf32, #tpu.memory_space<vmem>>, %arg5: memref<32x128xf32, #tpu.memory_space<vmem>>) attributes {dimension_semantics = [#tpu.dimension_semantics<parallel>], iteration_bounds = array<i64: 2>, scalar_prefetch = 0 : i64, scratch_operands = 0 : i64, tpu.core_type = #tpu.core_type<tc>, window_params = [{pipeline_mode = #tpu.pipeline_mode<synchronous>, transform_indices = @transform_0, window_bounds = array<i64: 64, 16>}, {transform_indices = @transform_1, window_bounds = array<i64: 32, 64>}, {pipeline_mode = #tpu.pipeline_mode<synchronous>, transform_indices = @transform_2, window_bounds = array<i64: 16, 128>}, {pipeline_mode = #tpu.pipeline_mode<synchronous>, transform_indices = @transform_3, window_bounds = array<i64: 3, 128>}, {transform_indices = @transform_4, window_bounds = array<i64: 32, 128>}]} {
    %c32_i32 = arith.constant 32 : i32
    %0 = arith.muli %arg0, %c32_i32 : i32
    %1 = tpu.assume_multiple %0, 32 : i32
    %c0 = arith.constant 0 : index
    %c0_0 = arith.constant 0 : index
    %2 = vector.load %arg3[%c0, %c0_0] : memref<16x128xf32, #tpu.memory_space<vmem>>, vector<16x128xf32>
    %c0_1 = arith.constant 0 : index
    %c0_2 = arith.constant 0 : index
    %3 = vector.load %arg4[%c0_1, %c0_2] : memref<3x128xf32, #tpu.memory_space<vmem>>, vector<1x128xf32>
    %c1 = arith.constant 1 : index
    %c0_3 = arith.constant 0 : index
    %4 = vector.load %arg4[%c1, %c0_3] : memref<3x128xf32, #tpu.memory_space<vmem>>, vector<1x128xf32>
    %c2 = arith.constant 2 : index
    %c0_4 = arith.constant 0 : index
    %5 = vector.load %arg4[%c2, %c0_4] : memref<3x128xf32, #tpu.memory_space<vmem>>, vector<1x128xf32>
    %c0_5 = arith.constant 0 : index
    %c0_6 = arith.constant 0 : index
    %6 = vector.load %arg1[%c0_5, %c0_6] : memref<64x16xf32, #tpu.memory_space<vmem>>, vector<64x16xf32>
    %cst = arith.constant dense<0.000000e+00> : vector<64x128xf32>
    %7 = tpu.matmul %6, %2, %cst {dimension_numbers = #tpu.dot_dimension_numbers<[1], [0], [0], [1], [0, 0, 1, 1], [], []>} : vector<64x16xf32>, vector<16x128xf32>, vector<64x128xf32> -> vector<64x128xf32>
    %8 = arith.index_cast %1 : i32 to index
    %c0_7 = arith.constant 0 : index
    %9 = vector.load %arg1[%8, %c0_7] : memref<64x16xf32, #tpu.memory_space<vmem>>, vector<32x16xf32>
    %cst_8 = arith.constant dense<0.000000e+00> : vector<32x128xf32>
    %10 = tpu.matmul %9, %2, %cst_8 {dimension_numbers = #tpu.dot_dimension_numbers<[1], [0], [0], [1], [0, 0, 1, 1], [], []>} : vector<32x16xf32>, vector<16x128xf32>, vector<32x128xf32> -> vector<32x128xf32>
    %11 = vector.broadcast %3 : vector<1x128xf32> to vector<64x128xf32>
    %12 = arith.mulf %7, %11 : vector<64x128xf32>
    %cst_9 = arith.constant dense<0.000000e+00> : vector<64xf32>
    %13 = vector.multi_reduction <add>, %12, %cst_9 [1] : vector<64x128xf32> to vector<64xf32>
    %14 = vector.shape_cast %13 : vector<64xf32> to vector<64x1xf32>
    %15 = vector.broadcast %4 : vector<1x128xf32> to vector<32x128xf32>
    %16 = arith.mulf %10, %15 : vector<32x128xf32>
    %cst_10 = arith.constant dense<0.000000e+00> : vector<32xf32>
    %17 = vector.multi_reduction <add>, %16, %cst_10 [1] : vector<32x128xf32> to vector<32xf32>
    %18 = vector.shape_cast %17 : vector<32xf32> to vector<32x1xf32>
    %cst_11 = arith.constant 1.000000e+00 : f32
    %19 = vector.broadcast %cst_11 : f32 to vector<32x1xf32>
    %cst_12 = arith.constant dense<0.000000e+00> : vector<32x64xf32>
    %20 = tpu.matmul %19, %14, %cst_12 {dimension_numbers = #tpu.dot_dimension_numbers<[1], [1], [0], [0], [0, 0, 1, 0], [], []>} : vector<32x1xf32>, vector<64x1xf32>, vector<32x64xf32> -> vector<32x64xf32>
    %21 = vector.broadcast %18 : vector<32x1xf32> to vector<32x64xf32>
    %22 = arith.addf %21, %20 : vector<32x64xf32>
    %cst_13 = arith.constant 0.000000e+00 : f32
    %23 = vector.broadcast %cst_13 : f32 to vector<32x64xf32>
    %24 = arith.cmpf ogt, %22, %23 : vector<32x64xf32>
    %cst_14 = arith.constant 2.000000e-01 : f32
    %25 = vector.broadcast %cst_14 : f32 to vector<32x64xf32>
    %26 = arith.mulf %25, %22 : vector<32x64xf32>
    %27 = arith.select %24, %22, %26 : vector<32x64xi1>, vector<32x64xf32>
    %c0_15 = arith.constant 0 : index
    %c0_16 = arith.constant 0 : index
    %28 = vector.load %arg2[%c0_15, %c0_16] : memref<32x64xf32, #tpu.memory_space<vmem>>, vector<32x64xf32>
    %cst_17 = arith.constant 0.000000e+00 : f32
    %29 = vector.broadcast %cst_17 : f32 to vector<32x64xf32>
    %30 = arith.cmpf ogt, %28, %29 : vector<32x64xf32>
    %cst_18 = arith.constant -1.000000e+30 : f32
    %31 = vector.broadcast %cst_18 : f32 to vector<32x64xf32>
    %32 = arith.select %30, %27, %31 : vector<32x64xi1>, vector<32x64xf32>
    %cst_19 = arith.constant dense<0xFF800000> : vector<32xf32>
    %33 = vector.multi_reduction <maximumf>, %32, %cst_19 [1] : vector<32x64xf32> to vector<32xf32>
    %34 = vector.shape_cast %33 : vector<32xf32> to vector<32x1xf32>
    %35 = vector.broadcast %34 : vector<32x1xf32> to vector<32x64xf32>
    %36 = arith.subf %32, %35 : vector<32x64xf32>
    %37 = math.exp %36 : vector<32x64xf32>
    %cst_20 = arith.constant dense<0.000000e+00> : vector<32xf32>
    %38 = vector.multi_reduction <add>, %37, %cst_20 [1] : vector<32x64xf32> to vector<32xf32>
    %39 = vector.shape_cast %38 : vector<32xf32> to vector<32x1xf32>
    %40 = tpu.reciprocal %39 : vector<32x1xf32> -> vector<32x1xf32>
    %41 = vector.broadcast %40 : vector<32x1xf32> to vector<32x64xf32>
    %42 = arith.mulf %37, %41 : vector<32x64xf32>
    %cst_21 = arith.constant dense<0.000000e+00> : vector<32x128xf32>
    %43 = tpu.matmul %42, %7, %cst_21 {dimension_numbers = #tpu.dot_dimension_numbers<[1], [0], [0], [1], [0, 0, 1, 1], [], []>} : vector<32x64xf32>, vector<64x128xf32>, vector<32x128xf32> -> vector<32x128xf32>
    %44 = vector.broadcast %5 : vector<1x128xf32> to vector<32x128xf32>
    %45 = arith.addf %43, %44 : vector<32x128xf32>
    %cst_22 = arith.constant 0.000000e+00 : f32
    %46 = vector.broadcast %cst_22 : f32 to vector<32x128xf32>
    %47 = arith.maximumf %45, %46 : vector<32x128xf32>
    %c0_23 = arith.constant 0 : index
    %c0_24 = arith.constant 0 : index
    %48 = vector.load %arg5[%c0_23, %c0_24] : memref<32x128xf32, #tpu.memory_space<vmem>>, vector<32x128xf32>
    tpu.vector_store %arg5[%c0_23, %c0_24], %47 {strides = array<i32>} : memref<32x128xf32, #tpu.memory_space<vmem>>, vector<32x128xf32>,
    return
  }
  func.func @transform_0(%arg0: i32) -> (i32, i32) {
    %c0_i32 = arith.constant 0 : i32
    %c0_i32_0 = arith.constant 0 : i32
    %c0_i32_1 = arith.constant 0 : i32
    return %c0_i32, %c0_i32_0 : i32, i32
  }
  func.func @transform_1(%arg0: i32) -> (i32, i32) {
    %c0_i32 = arith.constant 0 : i32
    %c0_i32_0 = arith.constant 0 : i32
    return %arg0, %c0_i32 : i32, i32
  }
  func.func @transform_2(%arg0: i32) -> (i32, i32) {
    %c0_i32 = arith.constant 0 : i32
    %c0_i32_0 = arith.constant 0 : i32
    %c0_i32_1 = arith.constant 0 : i32
    return %c0_i32, %c0_i32_0 : i32, i32
  }
  func.func @transform_3(%arg0: i32) -> (i32, i32) {
    %c0_i32 = arith.constant 0 : i32
    %c0_i32_0 = arith.constant 0 : i32
    %c0_i32_1 = arith.constant 0 : i32
    return %c0_i32, %c0_i32_0 : i32, i32
  }
  func.func @transform_4(%arg0: i32) -> (i32, i32) {
    %c0_i32 = arith.constant 0 : i32
    %c0_i32_0 = arith.constant 0 : i32
    return %arg0, %c0_i32 : i32, i32
  }
}

</mosaic_0001>

<bundles_post_ra>
// kernel: tpu_custom_call.1
= control target key start
LH: loop header
LB: loop body
LE: loop exit
PB: predicated region body
PF: predicated region fallthrough
CT: control target
= control target key end

     0   :  { %9 = vsyncpa [#allocation3], 0  ;;  %s1138_s0 = inlined_call_operand.vmem [shape: f32[64,16], index: 0, kind: input, shape index: {}]   ;;  %s1139_s1 = inlined_call_operand.vmem [shape: f32[64,64], index: 1, kind: input, shape index: {}]   ;;  %s1140_s2 = inlined_call_operand.vmem [shape: f32[16,128], index: 2, kind: input, shape index: {}]   ;;  %s1141_s3 = inlined_call_operand.hbm [shape: f32[3,128], index: 3, kind: input, shape index: {}]   ;;  %s1142_s4 = inlined_call_operand.hbm [shape: f32[64,128], index: 4, kind: output, shape index: {}]  }
   0x1   :  { %10 = vsyncpa [#allocation4], 0 }
   0x2   :  { %12 = vsyncpa [#allocation4 + $0x1], 0  ;;  %s955_s15 = smov 0   ;;  %s957_s16 = smov 0  }
   0x3   :  { %s959_s17 = smov 0   ;;  %s961_s18 = smov 0  }
   0x4 LB: > { %s976_s19 = sadd.s32 4294967295, %s924_s18   ;;  %s702_s20 = sadd.s32 4294967294, %s924_s18   ;;  %s924_s18 = sphi %s961_s18, %s1148_s18   ;;  %s920_s17 = sphi %s959_s17, %s1147_s17   ;;  %s916_s16 = sphi %s957_s16, %s1146_s16   ;;  %s912_s15 = sphi %s955_s15, %s1145_s15  }
   0x5   : > { %s980_s21 = sadd.s32 1, %s924_s18   ;;  %s114_s22 = sadd.s32 1, %s920_s17 }
   0x6   : > { %s111_s23 = ssub.s32 %s924_s18, %s980_s21  ;;  %p124_p0 = scmp.ne.s32.totalorder %s920_s17, %s916_s16 }
   0x7   : > { %p112_p1 = scmp.eq.s32.totalorder %s111_s23, 0  ;;  %p125_p2 = scmp.eq.s32.totalorder %s976_s19, 1 }
   0x8   : > { %p130_p3 = scmp.ne.s32.totalorder %s916_s16, %s912_s15  ;;  %p131_p4 = scmp.eq.s32.totalorder %s702_s20, 1 }
   0x9   : > { %s991_s24 = scalar_select %p112_p1, %s920_s17, %s114_s22  }
   0xa   : > { %p993_p5 = por %p125_p2, %p124_p0  ;;  %p997_p6 = por %p131_p4, %p130_p3 }
   0xb   : > { %p703_p7 = scmp.ge.s32.totalorder %s924_s18, 1  ;;  %p138_p8 = scmp.lt.s32.totalorder %s924_s18, 3 }
   0xc   : > { %p770_p9 = scmp.eq.s32.totalorder %s976_s19, 0  ;;  %s156_s29 = sshll.u32 %s1141_s3, 4  ;;  %s157_s29 = int_to_ptr.hbm [resolvable:$true] %s156_s29 }
   0xd   : > { %p139_p10 = pnand %p703_p7, %p138_p8  ;;  %s926_s30 = smov [#allocation2]  }
   0xe   : > { %s158_s5 = sshll.u32 %s926_s30, 4  ;;  %s159_s5 = int_to_ptr.vmem [resolvable:$true] %s158_s5 }
   0xf   : > { %p762_p11 = pneg %p139_p10  ;;  %180 = sbr.rel (%p139_p10) target bundleno = 905 (0x389), region = 36 }
  0x11   : > { %p763_p12 = pnand %p770_p9, %p762_p11 }
  0x13   : > { %765 = dma.hbm_to_vmem [thread:$0]  (!%p763_p12), %s157_s29, 64, %s159_s5, [#allocation3]  }
  0x14   : > { %903 = dma.done.wait (%p770_p9), [#allocation3], 64  }
  0x15   : > { %905 = vsyncadd (%p770_p9), [#allocation3], 4294967232  ;;  %v216_v0 = vld [vmem:[%s1140_s2 + $0x8] sm:$0xff]  ;;  %v215_v1 = vld [vmem:[%s1140_s2] sm:$0xff]  ;;  %vm228_vm0 = vcmask 130048   ;;  %s711_s9 = sshll.u32 %s976_s19, 5 }
  0x16   : > { %267 = vmatpush.msra.mxu0 %v216_v0  ;;  %v220_v2 = vld [vmem:[%s1138_s0] sm:$0xff]  ;;  %746 = vmatpush.msra.mxu1 %v216_v0  ;;  %v221_v3 = vld [vmem:[%s1138_s0 + $0x8] sm:$0xff]  ;;  %v227_v4 = vld [vmem:[%s1138_s0 + $0x38] sm:$0xff]  ;;  %s294_s12 = scalar_lea.vmem %s1138_s0, %s711_s9  ;;  %vm378_vm1 = vcmask 7168   ;;  %v927_v48 = vmov 1.0   ;;  %s709_s13 = sshll.u32 %s976_s19, 2 }
  0x17   : > { %v222_v5 = vld [vmem:[%s1138_s0 + $0x10] sm:$0xff]  ;;  %v223_v6 = vld [vmem:[%s1138_s0 + $0x18] sm:$0xff]  ;;  %v224_v7 = vld [vmem:[%s1138_s0 + $0x20] sm:$0xff]  ;;  %p208_p13 = scmp.lt.s32.totalorder %s709_s13, 7  ;;  %vm463_vm4 = vcmask 523264   ;;  %s204_s27 = sand.u32 1, %s916_s16  }
  0x18   : > { %268 = vmatpush.msra.mxu0 %v215_v1  ;;  %747 = vmatpush.msra.mxu1 %v215_v1  ;;  %v225_v8 = vld [vmem:[%s1138_s0 + $0x28] sm:$0xff]  ;;  %v226_v9 = vld [vmem:[%s1138_s0 + $0x30] sm:$0xff]  ;;  %v809_v11 = vld [vmem:[#allocation2] ss:$0 sm:$0xff]  ;;  %s708_s28 = sshll.u32 %s204_s27, 5  ;;  %s622_s6 = scalar_lea.hbm %s1142_s4, %s711_s9 }
  0x19   : > { %712 = vmatmul.msk.f32.vlgmr.msra.gmra.mxu0 %vm228_vm0, %v220_v2  ;;  %719 = vmatmul.msk.f32.vlgmr.msra.gmra.mxu1 %vm228_vm0, %v227_v4  ;;  %v295_v18 = vld [vmem:[%s294_s12] sm:$0xff]  ;;  %v296_v21 = vld [vmem:[%s294_s12 + $0x8] sm:$0xff]  ;;  %v297_v24 = vld [vmem:[%s294_s12 + $0x10] sm:$0xff]  ;;  %s1150_s13 = smov (!%p208_p13, %s709_s13), 7  ;;  %s206_s29 = scalar_lea.vmem [#allocation5], %s708_s28 }
  0x1a   : > { %325 = vmatpush.msrb.mxu1 %v216_v0  ;;  %v298_v28 = vld [vmem:[%s294_s12 + $0x18] sm:$0xff]  ;;  %v810_v33 = vld [vmem:[#allocation2 + $0x1] ss:$0 sm:$0xff]  ;;  %s710_s14 = sshll.u32 %s1150_s13, 3  ;;  %s625_s7 = sshll.u32 %s622_s6, 4  ;;  %s626_s7 = int_to_ptr.hbm [resolvable:$true] %s625_s7 }
  0x1b   : > { %s1079_s23 = scalar_lea.vmem %s1139_s1, %s710_s14  ;;  %s623_s8 = sshll.u32 %s206_s29, 4  ;;  %s624_s8 = int_to_ptr.vmem [resolvable:$true] %s623_s8 }
  0x1c   : > { %326 = vmatpush.msrb.mxu1 %v215_v1  ;;  %v451_v51 = vld [vmem:[%s1079_s23] sm:$0xff]  ;;  %v452_v58 = vld [vmem:[%s1079_s23 + $0x8] sm:$0xff]  ;;  %s611_s10 = scalar_lea.sflag [#allocation4], %s204_s27  ;;  %s872_s11 = sshra.s32 %s626_s7, 4  ;;  %s873_s11 = int_to_ptr.hbm [resolvable:$true] %s872_s11 }
  0x1d   : > { %vm455_vm3 = vcmp.gt.f32.partialorder %v451_v51, 0.0  ;;  %vm456_vm6 = vcmp.gt.f32.partialorder %v452_v58, 0.0  ;;  %s874_s12 = scalar_lea.hbm %s873_s11, 32  ;;  %s878_s13 = scalar_lea.hbm %s1142_s4, 64 }
  0x1e   : > { %p875_p0 = scmp.ne.s32.totalorder %s873_s11, %s874_s12  ;;  %p879_p3 = scmp.lt.s32.totalorder %s873_s11, %s1142_s4 }
  0x1f   : > { %p880_p4 = scmp.lt.s32.totalorder %s878_s13, %s874_s12 }
  0x20   : > { %p876_p1 = pnand %p875_p0, %p993_p5 }
  0x21   : > { %713 = vmatmul.msk.f32.gmra.mxu0 %vm228_vm0, %v221_v3  ;;  %720 = vmatmul.msk.f32.vlgmr.msrb.gmra.mxu1 %vm228_vm0, %v295_v18  ;;  %v453_v3 = vld [vmem:[%s1079_s23 + $0x10] sm:$0xff]  ;;  %p881_p7 = por %p880_p4, %p879_p3 }
  0x22   : > { %vm457_vm8 = vcmp.gt.f32.partialorder %v453_v3, 0.0  ;;  %p877_p2 = pneg %p876_p1 }
  0x24   : > { %p882_p8 = pnand %p881_p7, %p877_p2 }
  0x29   : > { %714 = vmatmul.msk.f32.gmra.mxu0 %vm228_vm0, %v222_v5  ;;  %721 = vmatmul.msk.f32.gmra.mxu1 %vm228_vm0, %v296_v21 }
  0x31   : > { %715 = vmatmul.msk.f32.gmra.mxu0 %vm228_vm0, %v223_v6  ;;  %722 = vmatmul.msk.f32.gmra.mxu1 %vm228_vm0, %v297_v24 }
  0x39   : > { %716 = vmatmul.msk.f32.gmra.mxu0 %vm228_vm0, %v224_v7  ;;  %723 = vmatmul.msk.f32.gmra.mxu1 %vm228_vm0, %v298_v28 }
  0x41   : > { %717 = vmatmul.msk.f32.gmra.mxu0 %vm228_vm0, %v225_v8 }
  0x49   : > { %718 = vmatmul.msk.f32.gmra.mxu0 %vm228_vm0, %v226_v9 }
  0x96   : > { %v270_v10 = vpop.f32.mrf.mxu0  ;;  %v291_v13 = vpop.f32.mrf.mxu1 }
  0x97   : > { %581 = vmatpush.msra.mxu3 %v291_v13  ;;  %v348_v14 = vmul.f32 %v809_v11, %v291_v13  ;;  %v341_v29 = vmul.f32 %v809_v11, %v270_v10 }
  0x99   : > { %363 = vadd.xlane.f32.xlu0 %v348_v14 }
  0x9e   : > { %v273_v12 = vpop.f32.mrf.mxu0  ;;  %v328_v32 = vpop.f32.mrf.mxu1 }
  0x9f   : > { %v342_v30 = vmul.f32 %v809_v11, %v273_v12  ;;  %v366_v35 = vmul.f32 %v810_v33, %v328_v32 }
  0xa6   : > { %v276_v15 = vpop.f32.mrf.mxu0  ;;  %v331_v37 = vpop.f32.mrf.mxu1 }
  0xa7   : > { %v343_v20 = vmul.f32 %v809_v11, %v276_v15  ;;  %v367_v38 = vmul.f32 %v810_v33, %v331_v37 }
  0xae   : > { %v279_v16 = vpop.f32.mrf.mxu0  ;;  %v334_v41 = vpop.f32.mrf.mxu1 }
  0xaf   : > { %v344_v17 = vmul.f32 %v809_v11, %v279_v16  ;;  %v368_v42 = vmul.f32 %v810_v33, %v334_v41 }
  0xb1   : > { %355 = vadd.xlane.f32.xlu2 %v344_v17 }
  0xb6   : > { %v282_v19 = vpop.f32.mrf.mxu0  ;;  %v337_v45 = vpop.f32.mrf.mxu1 }
  0xb7   : > { %v345_v27 = vmul.f32 %v809_v11, %v282_v19  ;;  %v369_v46 = vmul.f32 %v810_v33, %v337_v45 }
  0xb9   : > { %353 = vadd.xlane.f32.xlu2 %v343_v20 }
  0xbe   : > { %v285_v22 = vpop.f32.mrf.mxu0 }
  0xbf   : > { %v346_v23 = vmul.f32 %v809_v11, %v285_v22 }
  0xc1   : > { %359 = vadd.xlane.f32.xlu1 %v346_v23  ;;  %370 = vadd.xlane.f32.xlu2 %v366_v35 }
  0xc6   : > { %v288_v25 = vpop.f32.mrf.mxu0 }
  0xc7   : > { %v347_v26 = vmul.f32 %v809_v11, %v288_v25  ;;  %582 = vmatpush.msra.mxu3 %v288_v25  ;;  %v454_v11 = vld [vmem:[%s1079_s23 + $0x18] sm:$0xff] }
  0xc8   : > { %vm458_vm10 = vcmp.gt.f32.partialorder %v454_v11, 0.0 }
  0xc9   : > { %357 = vadd.xlane.f32.xlu1 %v345_v27  ;;  %583 = vmatpush.msra.mxu3 %v285_v22 }
  0xca   : > { %361 = vadd.xlane.f32.xlu0 %v347_v26  ;;  %376 = vadd.xlane.f32.xlu2 %v369_v46 }
  0xcb   : > { %584 = vmatpush.msra.mxu3 %v282_v19 }
  0xcd   : > { %585 = vmatpush.msra.mxu3 %v279_v16 }
  0xcf   : > { %586 = vmatpush.msra.mxu3 %v276_v15 }
  0xd1   : > { %349 = vadd.xlane.f32.xlu1 %v341_v29  ;;  %587 = vmatpush.msra.mxu3 %v273_v12 }
  0xd2   : > { %351 = vadd.xlane.f32.xlu0 %v342_v30 }
  0xd3   : > { %588 = vmatpush.msra.mxu3 %v270_v10 }
  0xd9   : > { %374 = vadd.xlane.f32.xlu1 %v368_v42 }
  0xda   : > { %372 = vadd.xlane.f32.xlu0 %v367_v38 }
 0x10c   : > { %v364_v31 = vpop.xlane.xlu0 %363 }
 0x10d   : > { %724 = vmatpush.xpose.msk.msra.mxu1 %vm378_vm1, %v364_v31  ;;  %748 = vmatpush.xpose.msk.msra.mxu2 %vm378_vm1, %v364_v31 }
 0x124   : > { %v356_v39 = vpop.xlane.xlu2 %355 }
 0x12c   : > { %v354_v43 = vpop.xlane.xlu2 %353 }
 0x134   : > { %v360_v34 = vpop.xlane.xlu1 %359  ;;  %v371_v49 = vpop.xlane.xlu2 %370 }
 0x13c   : > { %v358_v40 = vpop.xlane.xlu1 %357 }
 0x13d   : > { %v362_v36 = vpop.xlane.xlu0 %361  ;;  %v377_v7 = vpop.xlane.xlu2 %376 }
 0x13e   : > { %725 = vmatpush.xpose.msk.msra.mxu1 %vm378_vm1, %v362_v36  ;;  %749 = vmatpush.xpose.msk.msra.mxu2 %vm378_vm1, %v362_v36 }
 0x142   : > { %726 = vmatpush.xpose.msk.msra.mxu1 %vm378_vm1, %v360_v34  ;;  %750 = vmatpush.xpose.msk.msra.mxu2 %vm378_vm1, %v360_v34 }
 0x144   : > { %v350_v47 = vpop.xlane.xlu1 %349 }
 0x145   : > { %v352_v44 = vpop.xlane.xlu0 %351 }
 0x146   : > { %727 = vmatpush.xpose.msk.msra.mxu1 %vm378_vm1, %v358_v40  ;;  %751 = vmatpush.xpose.msk.msra.mxu2 %vm378_vm1, %v358_v40 }
 0x14a   : > { %728 = vmatpush.xpose.msk.msra.mxu1 %vm378_vm1, %v356_v39  ;;  %752 = vmatpush.xpose.msk.msra.mxu2 %vm378_vm1, %v356_v39 }
 0x14c   : > { %v375_v63 = vpop.xlane.xlu1 %374 }
 0x14d   : > { %v373_v54 = vpop.xlane.xlu0 %372 }
 0x14e   : > { %729 = vmatpush.xpose.msk.msra.mxu1 %vm378_vm1, %v354_v43  ;;  %753 = vmatpush.xpose.msk.msra.mxu2 %vm378_vm1, %v354_v43 }
 0x152   : > { %730 = vmatpush.xpose.msk.msra.mxu1 %vm378_vm1, %v352_v44  ;;  %754 = vmatpush.xpose.msk.msra.mxu2 %vm378_vm1, %v352_v44 }
 0x156   : > { %731 = vmatpush.xpose.msk.msra.mxu1 %vm378_vm1, %v350_v47  ;;  %755 = vmatpush.xpose.msk.msra.mxu2 %vm378_vm1, %v350_v47 }
 0x159   : > { %732 = vmatmul.msk.f32.vlgmr.msra.gmra.mxu1 %vm378_vm1, %v927_v48  ;;  %733 = vmatmul.msk.f32.vlgmr.msra.gmra.mxu2 %vm378_vm1, %v927_v48 }
 0x161   : > { %734 = vmatmul.msk.f32.gmra.mxu2 %vm378_vm1, %v927_v48 }
 0x169   : > { %735 = vmatmul.msk.f32.gmra.mxu2 %vm378_vm1, %v927_v48 }
 0x1d6   : > { %v423_v50 = vpop.f32.mrf.mxu1 }
 0x1d7   : > { %v435_v52 = vadd.f32 %v423_v50, %v371_v49 }
 0x1d9   : > { %v443_v53 = vmul.f32 0.2, %v435_v52  ;;  %vm439_vm2 = vcmp.gt.f32.partialorder %v435_v52, 0.0 }
 0x1db   : > { %v447_v55 = vsel %vm439_vm2, %v435_v52, %v443_v53 }
 0x1dc   : > { %v426_v56 = vpop.f32.mrf.mxu2  ;;  %v459_v57 = vsel %vm455_vm3, %v447_v55, -1e+30 }
 0x1dd   : > { %v436_v59 = vadd.f32 %v426_v56, %v373_v54  ;;  %v464_v60 = vsel %vm463_vm4, %v459_v57, -inf }
 0x1de   : > { %465 = vmax.xlane.f32.xlu0 %v464_v60 }
 0x1df   : > { %v444_v61 = vmul.f32 0.2, %v436_v59  ;;  %vm440_vm5 = vcmp.gt.f32.partialorder %v436_v59, 0.0 }
 0x1e1   : > { %v448_v62 = vsel %vm440_vm5, %v436_v59, %v444_v61 }
 0x1e2   : > { %v460_v0 = vsel %vm456_vm6, %v448_v62, -1e+30 }
 0x1e3   : > { %v467_v1 = vsel %vm463_vm4, %v460_v0, -inf }
 0x1e4   : > { %v429_v2 = vpop.f32.mrf.mxu2  ;;  %468 = vmax.xlane.f32.xlu1 %v467_v1 }
 0x1e5   : > { %v437_v4 = vadd.f32 %v429_v2, %v375_v63 }
 0x1e7   : > { %v445_v5 = vmul.f32 0.2, %v437_v4  ;;  %vm441_vm7 = vcmp.gt.f32.partialorder %v437_v4, 0.0 }
 0x1e9   : > { %v449_v6 = vsel %vm441_vm7, %v437_v4, %v445_v5 }
 0x1ea   : > { %v461_v8 = vsel %vm457_vm8, %v449_v6, -1e+30 }
 0x1eb   : > { %v470_v9 = vsel %vm463_vm4, %v461_v8, -inf }
 0x1ec   : > { %471 = vmax.xlane.f32.xlu2 %v470_v9  ;;  %v432_v10 = vpop.f32.mrf.mxu2 }
 0x1ed   : > { %v438_v12 = vadd.f32 %v432_v10, %v377_v7 }
 0x1ef   : > { %v446_v13 = vmul.f32 0.2, %v438_v12  ;;  %vm442_vm9 = vcmp.gt.f32.partialorder %v438_v12, 0.0 }
 0x1f1   : > { %v450_v14 = vsel %vm442_vm9, %v438_v12, %v446_v13 }
 0x1f2   : > { %v462_v15 = vsel %vm458_vm10, %v450_v14, -1e+30 }
 0x1f3   : > { %v473_v16 = vsel %vm463_vm4, %v462_v15, -inf }
 0x1f4   : > { %474 = vmax.xlane.f32.xlu0 %v473_v16 }
 0x251   : > { %v466_v17 = vpop.xlane.xlu0 %465 }
 0x252   : > { %v476_v18 = vsub.f32 %v459_v57, %v466_v17 }
 0x254   : > { %v480_v19 = vmul.f32 1.442695, %v476_v18 }
 0x256   : > { %812 = vpow2.f32 %v480_v19 }
 0x257   : > { %v469_v20 = vpop.xlane.xlu1 %468 }
 0x258   : > { %v477_v21 = vsub.f32 %v460_v0, %v469_v20 }
 0x25a   : > { %v482_v22 = vmul.f32 1.442695, %v477_v21  ;;  %v811_v21 = vld [vmem:[#allocation2 + $0x2] ss:$0 sm:$0xff] }
 0x25c   : > { %v813_v23 = vpop.eup %812  ;;  %814 = vpow2.f32 %v482_v22 }
 0x25d   : > { %v488_v24 = vsel %vm463_vm4, %v813_v23, 0.0 }
 0x25e   : > { %489 = vadd.xlane.f32.xlu1 %v488_v24 }
 0x25f   : > { %v472_v25 = vpop.xlane.xlu2 %471 }
 0x260   : > { %v478_v26 = vsub.f32 %v461_v8, %v472_v25 }
 0x262   : > { %v815_v27 = vpop.eup %814  ;;  %v484_v28 = vmul.f32 1.442695, %v478_v26 }
 0x263   : > { %v491_v29 = vsel %vm463_vm4, %v815_v27, 0.0 }
 0x264   : > { %816 = vpow2.f32 %v484_v28  ;;  %492 = vadd.xlane.f32.xlu2 %v491_v29 }
 0x267   : > { %v475_v30 = vpop.xlane.xlu0 %474 }
 0x268   : > { %v479_v31 = vsub.f32 %v462_v15, %v475_v30 }
 0x26a   : > { %v1091_v32 = vpop.eup %816  ;;  %v486_v33 = vmul.f32 1.442695, %v479_v31 }
 0x26b   : > { %v494_v34 = vsel %vm463_vm4, %v1091_v32, 0.0 }
 0x26c   : > { %818 = vpow2.f32 %v486_v33  ;;  %495 = vadd.xlane.f32.xlu0 %v494_v34 }
 0x272   : > { %v1095_v35 = vpop.eup %818 }
 0x273   : > { %v497_v36 = vsel %vm463_vm4, %v1095_v35, 0.0 }
 0x274   : > { %498 = vadd.xlane.f32.xlu1 %v497_v36 }
 0x2d1   : > { %v490_v37 = vpop.xlane.xlu1 %489 }
 0x2d2   : > { %820 = vrcp.f32 %v490_v37  ;;  %v511_v42 = vand.u32 2147483648, %v490_v37  ;;  %v509_v44 = vand.u32 2147483647, %v490_v37  ;;  %vm505_vm12 = vweird.f32 %v490_v37 }
 0x2d4   : > { %v512_v49 = vor.u32 1.1754944e-38, %v511_v42  ;;  %vm510_vm14 = vcmp.eq.f32.partialorder %v509_v44, 8.507059e+37 }
 0x2d7   : > { %v493_v38 = vpop.xlane.xlu2 %492 }
 0x2d8   : > { %v821_v39 = vpop.eup %820  ;;  %822 = vrcp.f32 %v493_v38  ;;  %v525_v54 = vand.u32 2147483648, %v493_v38  ;;  %v523_v56 = vand.u32 2147483647, %v493_v38  ;;  %vm519_vm0 = vweird.f32 %v493_v38 }
 0x2d9   : > { %v501_v40 = vmul.f32 %v821_v39, %v490_v37  ;;  %vm506_vm11 = vweird.f32 %v821_v39 }
 0x2da   : > { %vm507_vm13 = vmor %vm505_vm12, %vm506_vm11  ;;  %v526_v59 = vor.u32 1.1754944e-38, %v525_v54  ;;  %vm524_vm2 = vcmp.eq.f32.partialorder %v523_v56, 8.507059e+37 }
 0x2db   : > { %v502_v41 = vsub.f32 1.0, %v501_v40 }
 0x2dd   : > { %v503_v43 = vmul.f32 %v821_v39, %v502_v41 }
 0x2de   : > { %v823_v45 = vpop.eup %822 }
 0x2df   : > { %v515_v46 = vmul.f32 %v823_v45, %v493_v38  ;;  %v496_v47 = vpop.xlane.xlu0 %495  ;;  %v504_v48 = vadd.f32 %v821_v39, %v503_v43  ;;  %vm520_vm15 = vweird.f32 %v823_v45 }
 0x2e0   : > { %824 = vrcp.f32 %v496_v47  ;;  %vm521_vm1 = vmor %vm519_vm0, %vm520_vm15  ;;  %v539_v1 = vand.u32 2147483648, %v496_v47  ;;  %v537_v3 = vand.u32 2147483647, %v496_v47  ;;  %vm533_vm5 = vweird.f32 %v496_v47 }
 0x2e1   : > { %v516_v50 = vsub.f32 1.0, %v515_v46  ;;  %v508_v51 = vsel %vm507_vm13, %v821_v39, %v504_v48 }
 0x2e2   : > { %v513_v52 = vsel %vm510_vm14, %v512_v49, %v508_v51  ;;  %v540_v7 = vor.u32 1.1754944e-38, %v539_v1  ;;  %vm538_vm7 = vcmp.eq.f32.partialorder %v537_v3, 8.507059e+37 }
 0x2e3   : > { %v517_v53 = vmul.f32 %v823_v45, %v516_v50  ;;  %v556_v55 = vmul.f32 %v813_v23, %v513_v52 }
 0x2e5   : > { %v518_v57 = vadd.f32 %v823_v45, %v517_v53  ;;  %736 = vmatmul.msk.f32.vlgmr.msra.gmra.mxu3 %vm463_vm4, %v556_v55 }
 0x2e6   : > { %v825_v58 = vpop.eup %824 }
 0x2e7   : > { %v529_v60 = vmul.f32 %v825_v58, %v496_v47  ;;  %v499_v61 = vpop.xlane.xlu1 %498  ;;  %v522_v62 = vsel %vm521_vm1, %v823_v45, %v518_v57  ;;  %vm534_vm3 = vweird.f32 %v825_v58 }
 0x2e8   : > { %826 = vrcp.f32 %v499_v61  ;;  %v527_v0 = vsel %vm524_vm2, %v526_v59, %v522_v62  ;;  %vm535_vm6 = vmor %vm533_vm5, %vm534_vm3  ;;  %v553_v12 = vand.u32 2147483648, %v499_v61  ;;  %v551_v14 = vand.u32 2147483647, %v499_v61 }
 0x2e9   : > { %v530_v63 = vsub.f32 1.0, %v529_v60  ;;  %v557_v4 = vmul.f32 %v815_v27, %v527_v0  ;;  %vm547_vm9 = vweird.f32 %v499_v61 }
 0x2ea   : > { %v554_v17 = vor.u32 1.1754944e-38, %v553_v12  ;;  %vm552_vm11 = vcmp.eq.f32.partialorder %v551_v14, 8.507059e+37 }
 0x2eb   : > { %v531_v2 = vmul.f32 %v825_v58, %v530_v63 }
 0x2ed   : > { %v532_v5 = vadd.f32 %v825_v58, %v531_v2  ;;  %737 = vmatmul.msk.f32.gmra.mxu3 %vm463_vm4, %v557_v4 }
 0x2ee   : > { %v827_v6 = vpop.eup %826 }
 0x2ef   : > { %v543_v8 = vmul.f32 %v827_v6, %v499_v61  ;;  %v536_v9 = vsel %vm535_vm6, %v825_v58, %v532_v5  ;;  %vm548_vm8 = vweird.f32 %v827_v6 }
 0x2f0   : > { %v541_v10 = vsel %vm538_vm7, %v540_v7, %v536_v9  ;;  %vm549_vm10 = vmor %vm547_vm9, %vm548_vm8 }
 0x2f1   : > { %v544_v11 = vsub.f32 1.0, %v543_v8  ;;  %v558_v15 = vmul.f32 %v1091_v32, %v541_v10 }
 0x2f3   : > { %v545_v13 = vmul.f32 %v827_v6, %v544_v11 }
 0x2f5   : > { %v546_v16 = vadd.f32 %v827_v6, %v545_v13  ;;  %738 = vmatmul.msk.f32.gmra.mxu3 %vm463_vm4, %v558_v15 }
 0x2f7   : > { %v550_v18 = vsel %vm549_vm10, %v827_v6, %v546_v16 }
 0x2f8   : > { %v555_v19 = vsel %vm552_vm11, %v554_v17, %v550_v18 }
 0x2f9   : > { %v559_v20 = vmul.f32 %v1095_v35, %v555_v19 }
 0x2fd   : > { %739 = vmatmul.msk.f32.gmra.mxu3 %vm463_vm4, %v559_v20 }
 0x368   : > { %v590_v22 = vpop.f32.mrf.mxu3 }
 0x369   : > { %v591_v23 = vadd.f32 %v811_v21, %v590_v22 }
 0x36b   : > { %v602_v24 = vmax.f32 %v591_v23, 0.0 }
 0x36d   : > { %606 = vst [vmem:[%s206_s29] sm:$0xff] %v602_v24 }
 0x370   : > { %v593_v25 = vpop.f32.mrf.mxu3 }
 0x371   : > { %v594_v26 = vadd.f32 %v811_v21, %v593_v25 }
 0x373   : > { %v603_v27 = vmax.f32 %v594_v26, 0.0 }
 0x375   : > { %607 = vst [vmem:[%s206_s29 + $0x8] sm:$0xff] %v603_v27 }
 0x378   : > { %v596_v28 = vpop.f32.mrf.mxu3 }
 0x379   : > { %v597_v29 = vadd.f32 %v811_v21, %v596_v28 }
 0x37b   : > { %v604_v30 = vmax.f32 %v597_v29, 0.0 }
 0x37d   : > { %608 = vst [vmem:[%s206_s29 + $0x10] sm:$0xff] %v604_v30 }
 0x380   : > { %v599_v31 = vpop.f32.mrf.mxu3 }
 0x381   : > { %v600_v32 = vadd.f32 %v811_v21, %v599_v31 }
 0x383   : > { %v605_v33 = vmax.f32 %v600_v32, 0.0 }
 0x385   : > { %609 = vst [vmem:[%s206_s29 + $0x18] sm:$0xff] %v605_v33 }
 0x386   : > { %885 = shalt.err (!%p882_p8)
}
 0x387   : > { %s928_s22 = smov 128   ;;  %s929_s23 = smov 8  }
 0x388   : > { %760 = dma.vmem_to_hbm [thread:$0]  (%p993_p5), %s624_s8, 512, %s626_s7, %s611_s10, %s928_s22, %s928_s22, %s929_s23  }
 0x389 PF: > { %p772_p9 = scmp.ge.s32.totalorder %s924_s18, 2  ;;  %s640_s27 = sand.u32 1, %s912_s15  }
 0x38a   : > { %s641_s28 = scalar_lea.sflag [#allocation4], %s640_s27 }
 0x38b   : > { %p767_p10 = pnand %p772_p9, %p997_p6 }
 0x38d   : > { %p768_p11 = pneg %p767_p10 }
 0x38f   : > { %907 = dma.done.wait (%p768_p11), %s641_s28, 512  }
 0x390   : > { %909 = vsyncadd (%p768_p11), %s641_s28, 4294966784  ;;  %p15_p12 = scmp.ge.s32.totalorder %s980_s21, 4   ;;  %s1145_s15 = smov %s916_s16 }
 0x391   : > { %s1146_s16 = smov %s920_s17  ;;  %s1147_s17 = smov %s991_s24 }
 0x392   : > { %s1148_s18 = smov %s980_s21  ;;  %17 = sbr.rel (!%p15_p12) target bundleno = 4 (0x4), region = 77 }
 0x397   :  { %647 = vsyncpa [#allocation3], 1 }
 0x398   :  { %649 = vsyncpa [#allocation3 + $0x1], 1 }
 0x399   :  { %650 = vsyncpa [#allocation4], 1 }
 0x39a   :  { %652 = vsyncpa [#allocation4 + $0x1], 1 }

</bundles_post_ra>
